<compile_context>
chip_gen: v7x
topology: tpu7x:2x2x1
jax: 0.10.0
libtpu: 0.0.40
codegen_flags: <defaults>
</compile_context>

<pallas_src>
from functools import partial

import jax
import jax.numpy as jnp
from jax import lax
from jax.experimental import pallas as pl
from jax.experimental.pallas import tpu as pltpu


# --------------------------------------------------------------------------- #
# Kernel bodies
# --------------------------------------------------------------------------- #
def _rnn_forward_block(ids, proj, whh_bf16, wc, bc0, *, T, b):
    """Fused embedding-gather + tanh-RNN + last-step linear + sigmoid.

    ids      : (T*b, 1) i32  token ids, time-major flattened (row = t*b + j)
    proj     : (Vp, H)  f32  precomputed emb @ W_ih^T + (b_ih + b_hh)
    whh_bf16 : (H, H)   bf16 W_hh^T
    wc       : (1, H)   f32  classifier weight row
    bc0      : scalar   f32  classifier bias
    returns  : (b, 1)   f32  sigmoid(logits)
    """
    V = proj.shape[0]
    TB = T * b

    # Exact row gather via one-hot matmul (ids already projected through W_ih).
    iota_v = lax.broadcasted_iota(jnp.int32, (TB, V), 1)          # (T*b, V)
    onehot = (ids == iota_v).astype(jnp.float32)                  # 0/1 rows
    xw = jnp.dot(onehot, proj, preferred_element_type=jnp.float32)  # (T*b, H)

    # Recurrence: only h @ W_hh^T + xw[t]; fully unrolled (T static).
    # t = 0: h_prev = 0, so the hidden matmul vanishes.
    h = jnp.tanh(xw[0:b, :])
    for t in range(1, T):
        hh = jnp.dot(h.astype(jnp.bfloat16), whh_bf16,
                     preferred_element_type=jnp.float32)           # bf16 MXU, f32 acc
        h = jnp.tanh(xw[t * b:(t + 1) * b, :] + hh)                # f32 VPU/EUP

    # Classifier off the MXU: VPU multiply + lane reduce + scalar SMEM bias.
    logits = jnp.sum(h * wc, axis=-1, keepdims=True) + bc0
    return jax.nn.sigmoid(logits)


def _predict_kernel(ids_ref, proj_ref, whh_ref, wc_ref, bc_ref, out_ref, *, T, b):
    out_ref[...] = _rnn_forward_block(
        ids_ref[...], proj_ref[...], whh_ref[...], wc_ref[...], bc_ref[0],
        T=T, b=b)


def _loss_kernel(ids_ref, proj_ref, whh_ref, wc_ref, bc_ref, y_ref, loss_ref,
                 *, T, b, n_valid):
    """Forward + fused MSE loss (mean over the n_valid real rows)."""
    y_pred = _rnn_forward_block(
        ids_ref[...], proj_ref[...], whh_ref[...], wc_ref[...], bc_ref[0],
        T=T, b=b)
    row = lax.broadcasted_iota(jnp.int32, (b, 1), 0)
    d = jnp.where(row < n_valid, y_pred - y_ref[...], 0.0)
    loss_ref[...] = jnp.sum(d * d, axis=0, keepdims=True) * (1.0 / n_valid)


# --------------------------------------------------------------------------- #
# Parameter preparation (runs ONCE, outside the per-call path)
# --------------------------------------------------------------------------- #
def prepare_params(params):
    emb, w_ih, w_hh, b_ih, b_hh, w_c, b_c = (
        params["emb"], params["w_ih"], params["w_hh"], params["b_ih"],
        params["b_hh"], params["w_c"], params["b_c"])
    V, D = emb.shape
    H = w_hh.shape[0]
    V_pad = ((V + 7) // 8) * 8                       # sublane-align vocab dim

    emb_p = jnp.zeros((V_pad, D), jnp.float32).at[:V].set(emb.astype(jnp.float32))
    # Hoisted input projection (exact f32): proj[v] = emb[v] @ W_ih^T + b_ih + b_hh
    proj = jnp.dot(emb_p, w_ih.T.astype(jnp.float32),
                   precision=jax.lax.Precision.HIGHEST)
    proj = proj + (b_ih + b_hh).astype(jnp.float32).reshape(1, H)

    return {
        "proj": proj,                                            # (V_pad, H) f32
        "whh_t": w_hh.T.astype(jnp.bfloat16),                    # (H, H)     bf16
        "wc": w_c.reshape(1, H).astype(jnp.float32),             # (1, H)     f32
        "bc": b_c.reshape(1).astype(jnp.float32),                # (1,)       f32
    }


# --------------------------------------------------------------------------- #
# Forward wrapper (mirror of TorchModel.forward)
# --------------------------------------------------------------------------- #
@partial(jax.jit, static_argnames=("batch_block",))
def torch_model_forward(x_ids, prepared, y=None, batch_block=256):
    """x_ids: (B, T) int.  Returns (B, 1) predictions, or scalar MSE loss."""
    proj, whh, wc, bc = (prepared["proj"], prepared["whh_t"],
                         prepared["wc"], prepared["bc"])
    B, T = x_ids.shape
    Vp, H = proj.shape

    vmem = pl.BlockSpec(memory_space=pltpu.MemorySpace.VMEM)
    smem = pl.BlockSpec(memory_space=pltpu.MemorySpace.SMEM)

    if B <= batch_block:
        # ---------------- gridless path (small batch) ----------------------
        Bp = ((B + 7) // 8) * 8                       # sublane-align batch
        ids = x_ids.astype(jnp.int32)
        if Bp != B:
            ids = jnp.zeros((Bp, T), jnp.int32).at[:B].set(ids)
        ids_tm = jnp.transpose(ids).reshape(T * Bp, 1)    # time-major (t*Bp + b)

        if y is not None:
            y_f = y.astype(jnp.float32).reshape(B, 1)
            if Bp != B:
                y_f = jnp.zeros((Bp, 1), jnp.float32).at[:B].set(y_f)
            loss = pl.pallas_call(
                partial(_loss_kernel, T=T, b=Bp, n_valid=B),
                out_shape=jax.ShapeDtypeStruct((1, 1), jnp.float32),
                in_specs=[vmem, vmem, vmem, vmem, smem, vmem],
                out_specs=vmem,
            )(ids_tm, proj, whh, wc, bc, y_f)
            return loss[0, 0]

        y_pred = pl.pallas_call(
            partial(_predict_kernel, T=T, b=Bp),
            out_shape=jax.ShapeDtypeStruct((Bp, 1), jnp.float32),
            in_specs=[vmem, vmem, vmem, vmem, smem],
            out_specs=vmem,
        )(ids_tm, proj, whh, wc, bc)
        return y_pred[:B]

    # ------------- batch-blocked grid path (large batch / v7x) -------------
    bb = batch_block
    assert bb % 8 == 0, "batch_block must be a multiple of 8"
    nb = -(-B // bb)
    Bp = nb * bb
    ids = jnp.zeros((Bp, T), jnp.int32).at[:B].set(x_ids.astype(jnp.int32))
    # (nb, T*bb, 1), time-major within each batch block.
    ids3 = ids.reshape(nb, bb, T).transpose(0, 2, 1).reshape(nb, T * bb, 1)

    y_pred = pl.pallas_call(
        partial(_predict_kernel, T=T, b=bb),
        out_shape=jax.ShapeDtypeStruct((Bp, 1), jnp.float32),
        grid=(nb,),
        in_specs=[
            pl.BlockSpec((None, T * bb, 1), lambda i: (i, 0, 0)),   # ids block
            pl.BlockSpec((Vp, H), lambda i: (0, 0)),                # proj
            pl.BlockSpec((H, H), lambda i: (0, 0)),                 # W_hh^T (bf16)
            pl.BlockSpec((1, H), lambda i: (0, 0)),                 # classifier w
            smem,                                                   # classifier b
        ],
        out_specs=pl.BlockSpec((bb, 1), lambda i: (i, 0)),
        compiler_params=pltpu.CompilerParams(
            dimension_semantics=("parallel",)),
    )(ids3, proj, whh, wc, bc)
    y_pred = y_pred[:B]

    if y is not None:
        return jnp.mean((y_pred - y.astype(jnp.float32).reshape(B, 1)) ** 2)
    return y_pred


# --------------------------------------------------------------------------- #
# Pure-JAX reference + synthetic params
# --------------------------------------------------------------------------- #
def _reference_forward(x_ids, params):
    emb, w_ih, w_hh, b_ih, b_hh, w_c, b_c = (
        params["emb"], params["w_ih"], params["w_hh"], params["b_ih"],
        params["b_hh"], params["w_c"], params["b_c"])
    x = jnp.take(emb, x_ids, axis=0)                # (B, T, D)
    B, T, _ = x.shape
    H = w_hh.shape[0]
    h = jnp.zeros((B, H), jnp.float32)
    for t in range(T):
        h = jnp.tanh(x[:, t, :] @ w_ih.T + b_ih + h @ w_hh.T + b_hh)
    return jax.nn.sigmoid(h @ w_c.T + b_c)


def _init_params(key, vocab_size, vector_dim, hidden_dim):
    ks = jax.random.split(key, 7)
    k = 1.0 / jnp.sqrt(hidden_dim)
    u = lambda kk, shape, lim: jax.random.uniform(kk, shape, jnp.float32, -lim, lim)
    return {
        "emb":  jax.random.normal(ks[0], (vocab_size, vector_dim), jnp.float32),
        "w_ih": u(ks[1], (hidden_dim, vector_dim), k),
        "w_hh": u(ks[2], (hidden_dim, hidden_dim), k),
        "b_ih": u(ks[3], (hidden_dim,), k),
        "b_hh": u(ks[4], (hidden_dim,), k),
        "w_c":  u(ks[5], (1, hidden_dim), k),
        "b_c":  u(ks[6], (1,), k),
    }


if __name__ == "__main__":
    # Small shapes consistent with the module: vocab=30, D=16, T=8, H=32, B=8.
    VOCAB, D, T, H, B = 30, 16, 8, 32, 8
    ATOL = 2e-2                                     # bf16 recurrence operands

    key = jax.random.PRNGKey(0)
    k_params, k_ids, k_ids2, k_y = jax.random.split(key, 4)
    params = _init_params(k_params, VOCAB, D, H)
    prepared = prepare_params(params)               # one-time param prep

    # ---- inference path (gridless) -----------------------------------------
    x_ids = jax.random.randint(k_ids, (B, T), 0, VOCAB, dtype=jnp.int32)
    y_pred = jax.block_until_ready(torch_model_forward(x_ids, prepared))
    y_ref = _reference_forward(x_ids, params)
    assert y_pred.shape == (B, 1)
    assert jnp.allclose(y_pred, y_ref, atol=ATOL, rtol=0.0), (
        "Pallas output mismatch vs reference (gridless path)")

    # ---- batch-blocked grid path (exercised with a tiny block) -------------
    x_ids2 = jax.random.randint(k_ids2, (2 * B, T), 0, VOCAB, dtype=jnp.int32)
    y_pred2 = jax.block_until_ready(
        torch_model_forward(x_ids2, prepared, batch_block=8))
    y_ref2 = _reference_forward(x_ids2, params)
    assert y_pred2.shape == (2 * B, 1)
    assert jnp.allclose(y_pred2, y_ref2, atol=ATOL, rtol=0.0), (
        "Pallas output mismatch vs reference (grid path)")

    # ---- training/eval path: fused MSE loss ---------------------------------
    y_true = (jax.random.uniform(k_y, (B, 1)) > 0.5).astype(jnp.float32)
    loss = jax.block_until_ready(torch_model_forward(x_ids, prepared, y_true))
    loss_ref = jnp.mean((y_ref - y_true) ** 2)
    assert loss.shape == ()
    assert jnp.abs(loss - loss_ref) < ATOL, "Fused MSE loss mismatch vs reference"

    print("KERNEL_OK")
</pallas_src>

<mosaic_0001>
module attributes {stable_mosaic.version = 11 : i64} {
  func.func @_predict_kernel(%arg0: memref<64x1xi32, #tpu.memory_space<vmem>>, %arg1: memref<32x32xf32, #tpu.memory_space<vmem>>, %arg2: memref<32x32xbf16, #tpu.memory_space<vmem>>, %arg3: memref<1x32xf32, #tpu.memory_space<vmem>>, %arg4: memref<1xf32, #tpu.memory_space<smem>>, %arg5: memref<8x1xf32, #tpu.memory_space<vmem>>) attributes {dimension_semantics = [], scalar_prefetch = 0 : i64, scratch_operands = 0 : i64, tpu.core_type = #tpu.core_type<tc>} {
    %c0 = arith.constant 0 : index
    %c0_0 = arith.constant 0 : index
    %0 = vector.load %arg0[%c0, %c0_0] : memref<64x1xi32, #tpu.memory_space<vmem>>, vector<64x1xi32>
    %c0_1 = arith.constant 0 : index
    %c0_2 = arith.constant 0 : index
    %1 = vector.load %arg1[%c0_1, %c0_2] : memref<32x32xf32, #tpu.memory_space<vmem>>, vector<32x32xf32>
    %c0_3 = arith.constant 0 : index
    %c0_4 = arith.constant 0 : index
    %2 = vector.load %arg2[%c0_3, %c0_4] : memref<32x32xbf16, #tpu.memory_space<vmem>>, vector<32x32xbf16>
    %c0_5 = arith.constant 0 : index
    %c0_6 = arith.constant 0 : index
    %3 = vector.load %arg3[%c0_5, %c0_6] : memref<1x32xf32, #tpu.memory_space<vmem>>, vector<1x32xf32>
    %c0_7 = arith.constant 0 : index
    %4 = memref.load %arg4[%c0_7] : memref<1xf32, #tpu.memory_space<smem>>
    %5 = tpu.iota {dimensions = array<i32: 1>} : vector<64x32xi32>
    %6 = vector.broadcast %0 : vector<64x1xi32> to vector<64x32xi32>
    %7 = arith.cmpi eq, %6, %5 : vector<64x32xi32>
    %8 = arith.extui %7 : vector<64x32xi1> to vector<64x32xi32>
    %9 = arith.sitofp %8 : vector<64x32xi32> to vector<64x32xf32>
    %cst = arith.constant dense<0.000000e+00> : vector<64x32xf32>
    %10 = tpu.matmul %9, %1, %cst {dimension_numbers = #tpu.dot_dimension_numbers<[1], [0], [0], [1], [0, 0, 1, 1], [], []>} : vector<64x32xf32>, vector<32x32xf32>, vector<64x32xf32> -> vector<64x32xf32>
    %11 = vector.extract_strided_slice %10 {offsets = [0, 0], sizes = [8, 32], strides = [1, 1]} : vector<64x32xf32> to vector<8x32xf32>
    %12 = math.tanh %11 : vector<8x32xf32>
    %13 = arith.truncf %12 : vector<8x32xf32> to vector<8x32xbf16>
    %cst_8 = arith.constant dense<0.000000e+00> : vector<8x32xf32>
    %14 = tpu.matmul %13, %2, %cst_8 {dimension_numbers = #tpu.dot_dimension_numbers<[1], [0], [0], [1], [0, 0, 1, 1], [], []>} : vector<8x32xbf16>, vector<32x32xbf16>, vector<8x32xf32> -> vector<8x32xf32>
    %15 = vector.extract_strided_slice %10 {offsets = [8, 0], sizes = [8, 32], strides = [1, 1]} : vector<64x32xf32> to vector<8x32xf32>
    %16 = arith.addf %15, %14 : vector<8x32xf32>
    %17 = math.tanh %16 : vector<8x32xf32>
    %18 = arith.truncf %17 : vector<8x32xf32> to vector<8x32xbf16>
    %cst_9 = arith.constant dense<0.000000e+00> : vector<8x32xf32>
    %19 = tpu.matmul %18, %2, %cst_9 {dimension_numbers = #tpu.dot_dimension_numbers<[1], [0], [0], [1], [0, 0, 1, 1], [], []>} : vector<8x32xbf16>, vector<32x32xbf16>, vector<8x32xf32> -> vector<8x32xf32>
    %20 = vector.extract_strided_slice %10 {offsets = [16, 0], sizes = [8, 32], strides = [1, 1]} : vector<64x32xf32> to vector<8x32xf32>
    %21 = arith.addf %20, %19 : vector<8x32xf32>
    %22 = math.tanh %21 : vector<8x32xf32>
    %23 = arith.truncf %22 : vector<8x32xf32> to vector<8x32xbf16>
    %cst_10 = arith.constant dense<0.000000e+00> : vector<8x32xf32>
    %24 = tpu.matmul %23, %2, %cst_10 {dimension_numbers = #tpu.dot_dimension_numbers<[1], [0], [0], [1], [0, 0, 1, 1], [], []>} : vector<8x32xbf16>, vector<32x32xbf16>, vector<8x32xf32> -> vector<8x32xf32>
    %25 = vector.extract_strided_slice %10 {offsets = [24, 0], sizes = [8, 32], strides = [1, 1]} : vector<64x32xf32> to vector<8x32xf32>
    %26 = arith.addf %25, %24 : vector<8x32xf32>
    %27 = math.tanh %26 : vector<8x32xf32>
    %28 = arith.truncf %27 : vector<8x32xf32> to vector<8x32xbf16>
    %cst_11 = arith.constant dense<0.000000e+00> : vector<8x32xf32>
    %29 = tpu.matmul %28, %2, %cst_11 {dimension_numbers = #tpu.dot_dimension_numbers<[1], [0], [0], [1], [0, 0, 1, 1], [], []>} : vector<8x32xbf16>, vector<32x32xbf16>, vector<8x32xf32> -> vector<8x32xf32>
    %30 = vector.extract_strided_slice %10 {offsets = [32, 0], sizes = [8, 32], strides = [1, 1]} : vector<64x32xf32> to vector<8x32xf32>
    %31 = arith.addf %30, %29 : vector<8x32xf32>
    %32 = math.tanh %31 : vector<8x32xf32>
    %33 = arith.truncf %32 : vector<8x32xf32> to vector<8x32xbf16>
    %cst_12 = arith.constant dense<0.000000e+00> : vector<8x32xf32>
    %34 = tpu.matmul %33, %2, %cst_12 {dimension_numbers = #tpu.dot_dimension_numbers<[1], [0], [0], [1], [0, 0, 1, 1], [], []>} : vector<8x32xbf16>, vector<32x32xbf16>, vector<8x32xf32> -> vector<8x32xf32>
    %35 = vector.extract_strided_slice %10 {offsets = [40, 0], sizes = [8, 32], strides = [1, 1]} : vector<64x32xf32> to vector<8x32xf32>
    %36 = arith.addf %35, %34 : vector<8x32xf32>
    %37 = math.tanh %36 : vector<8x32xf32>
    %38 = arith.truncf %37 : vector<8x32xf32> to vector<8x32xbf16>
    %cst_13 = arith.constant dense<0.000000e+00> : vector<8x32xf32>
    %39 = tpu.matmul %38, %2, %cst_13 {dimension_numbers = #tpu.dot_dimension_numbers<[1], [0], [0], [1], [0, 0, 1, 1], [], []>} : vector<8x32xbf16>, vector<32x32xbf16>, vector<8x32xf32> -> vector<8x32xf32>
    %40 = vector.extract_strided_slice %10 {offsets = [48, 0], sizes = [8, 32], strides = [1, 1]} : vector<64x32xf32> to vector<8x32xf32>
    %41 = arith.addf %40, %39 : vector<8x32xf32>
    %42 = math.tanh %41 : vector<8x32xf32>
    %43 = arith.truncf %42 : vector<8x32xf32> to vector<8x32xbf16>
    %cst_14 = arith.constant dense<0.000000e+00> : vector<8x32xf32>
    %44 = tpu.matmul %43, %2, %cst_14 {dimension_numbers = #tpu.dot_dimension_numbers<[1], [0], [0], [1], [0, 0, 1, 1], [], []>} : vector<8x32xbf16>, vector<32x32xbf16>, vector<8x32xf32> -> vector<8x32xf32>
    %45 = vector.extract_strided_slice %10 {offsets = [56, 0], sizes = [8, 32], strides = [1, 1]} : vector<64x32xf32> to vector<8x32xf32>
    %46 = arith.addf %45, %44 : vector<8x32xf32>
    %47 = math.tanh %46 : vector<8x32xf32>
    %48 = vector.broadcast %3 : vector<1x32xf32> to vector<8x32xf32>
    %49 = arith.mulf %47, %48 : vector<8x32xf32>
    %cst_15 = arith.constant dense<0.000000e+00> : vector<8xf32>
    %50 = vector.multi_reduction <add>, %49, %cst_15 [1] : vector<8x32xf32> to vector<8xf32>
    %51 = vector.shape_cast %50 : vector<8xf32> to vector<8x1xf32>
    %52 = vector.broadcast %4 : f32 to vector<8x1xf32>
    %53 = arith.addf %51, %52 : vector<8x1xf32>
    %54 = arith.negf %53 : vector<8x1xf32>
    %55 = math.exp %54 : vector<8x1xf32>
    %cst_16 = arith.constant 1.000000e+00 : f32
    %56 = vector.broadcast %cst_16 : f32 to vector<8x1xf32>
    %57 = arith.addf %56, %55 : vector<8x1xf32>
    %58 = arith.divf %56, %57 : vector<8x1xf32>
    %c0_17 = arith.constant 0 : index
    %c0_18 = arith.constant 0 : index
    %59 = vector.load %arg5[%c0_17, %c0_18] : memref<8x1xf32, #tpu.memory_space<vmem>>, vector<8x1xf32>
    tpu.vector_store %arg5[%c0_17, %c0_18], %58 {strides = array<i32>} : memref<8x1xf32, #tpu.memory_space<vmem>>, vector<8x1xf32>,
    return
  }
}

</mosaic_0001>

<bundles_post_ra>
// kernel: torch_model_forward.1
= control target key start
LH: loop header
LB: loop body
LE: loop exit
PB: predicated region body
PF: predicated region fallthrough
CT: control target
= control target key end

     0   :  { %v750_v0 = vmov 0   ;;  %v751_v7 = vmov 0.0   ;;  %v40_v15 = vlaneseq  ;;  %vm90_vm0 = vcmask 261120   ;;  %s904_s0 = inlined_call_operand.vmem [shape: s32[64,1], index: 0, kind: input, shape index: {}]   ;;  %s905_s1 = inlined_call_operand.vmem [shape: f32[32,32], index: 1, kind: input, shape index: {}]   ;;  %s906_s2 = inlined_call_operand.vmem [shape: bf16[32,32], index: 2, kind: input, shape index: {}]   ;;  %s907_s3 = inlined_call_operand.vmem [shape: f32[1,32], index: 3, kind: input, shape index: {}]   ;;  %s908_s4 = inlined_call_operand.<no memory space> [shape: f32[1], index: 4, kind: input, shape index: {}]   ;;  %s909_s5 = inlined_call_operand.vmem [shape: f32[8,1], index: 5, kind: output, shape index: {}]  }
   0x1   :  { %726 = vset.pattern.permute.xlu0 %v750_v0  ;;  %v22_v1 = vld [vmem:[%s904_s0] sm:$0xff]  ;;  %727 = vset.pattern.permute.xlu1 %v750_v0  ;;  %v24_v2 = vld [vmem:[%s904_s0 + $0x10] sm:$0xff]  ;;  %v23_v3 = vld [vmem:[%s904_s0 + $0x8] sm:$0xff]  ;;  %vm752_vm8 = vmmov 0   ;;  %vm573_vm10 = vcmask 7168  }
   0x2   :  { %43 = vperm.xlu0 %726, %v22_v1   ;;  %49 = vperm.xlu1 %727, %v24_v2   ;;  %v25_v4 = vld [vmem:[%s904_s0 + $0x18] sm:$0xff]  ;;  %v30_v5 = vld [vmem:[%s905_s1] sm:$0xff]  ;;  %v31_v6 = vld [vmem:[%s905_s1 + $0x8] sm:$0xff]  ;;  %v41_v16 = vand.u32 127, %v40_v15 }
   0x3   :  { %659 = vmatprep.subr.bf16.mxu1 %v751_v7  ;;  %v715_v8 = vpack.c.bf16 %v31_v6, %v30_v5  ;;  %v32_v9 = vld [vmem:[%s905_s1 + $0x10] sm:$0xff]  ;;  %v33_v10 = vld [vmem:[%s905_s1 + $0x18] sm:$0xff]  ;;  %v26_v12 = vld [vmem:[%s904_s0 + $0x20] sm:$0xff]  ;;  %663 = vmatprep.mubr.msk.bf16.mxu1 %vm752_vm8, %v751_v7 }
   0x4   :  { %v719_v11 = vpack.c.bf16 %v33_v10, %v32_v9  ;;  %v27_v13 = vld [vmem:[%s904_s0 + $0x28] sm:$0xff]  ;;  %v28_v14 = vld [vmem:[%s904_s0 + $0x30] sm:$0xff]  ;;  %v835_v31 = vld [vmem:[%s906_s2] sm:$0xff]  }
   0x5   :  { %716 = vmatprep.subr.bf16.mxu0 %v715_v8  ;;  %660 = vmatpush3.bf16.msra.mxu1 %v835_v31  ;;  %v844_v32 = vld [vmem:[%s906_s2 + $0x8] sm:$0xff]   ;;  %v29_v33 = vld [vmem:[%s904_s0 + $0x38] sm:$0xff] }
   0x6   :  { %46 = vperm.xlu0 %726, %v23_v3   ;;  %52 = vperm.xlu1 %727, %v25_v4  }
   0x7   :  { %718 = vmatpush3.bf16.msra.mxu0 %v715_v8  ;;  %661 = vmatprep.subr.bf16.mxu1 %v751_v7 }
   0x8   :  { %720 = vmatprep.subr.bf16.mxu0 %v719_v11 }
   0x9   :  { %662 = vmatpush3.bf16.msra.mxu1 %v844_v32 }
   0xa   :  { %55 = vperm.xlu0 %726, %v26_v12   ;;  %58 = vperm.xlu1 %727, %v27_v13  }
   0xb   :  { %722 = vmatpush3.bf16.msra.mxu0 %v719_v11  ;;  %667 = vmatprep.subr.bf16.mxu1 %v751_v7 }
   0xc   :  { %675 = vmatprep.subr.bf16.mxu0 %v751_v7 }
   0xe   :  { %61 = vperm.xlu0 %726, %v28_v14   ;;  %64 = vperm.xlu1 %727, %v29_v33   ;;  %v565_v33 = vstv %s908_s4 }
  0x81   :  { %v44_v17 = vpop.permute.xlu0 %43  ;;  %v50_v18 = vpop.permute.xlu1 %49 }
  0x82   :  { %vm66_vm1 = vcmp.eq.s32.totalorder %v44_v17, %v41_v16  ;;  %vm68_vm2 = vcmp.eq.s32.totalorder %v50_v18, %v41_v16 }
  0x83   :  { %v579_v19 = vsel %vm66_vm1, 1.0, %v751_v7  ;;  %v581_v22 = vsel %vm68_vm2, 1.0, %v751_v7 }
  0x84   :  { %647 = vmatprep.mubr.msk.f32.mxu0 %vm90_vm0, %v579_v19 }
  0x85   :  { %v47_v20 = vpop.permute.xlu0 %46  ;;  %v53_v21 = vpop.permute.xlu1 %52 }
  0x86   :  { %vm67_vm3 = vcmp.eq.s32.totalorder %v47_v20, %v41_v16  ;;  %vm69_vm4 = vcmp.eq.s32.totalorder %v53_v21, %v41_v16 }
  0x87   :  { %v580_v23 = vsel %vm67_vm3, 1.0, %v751_v7  ;;  %v582_v24 = vsel %vm69_vm4, 1.0, %v751_v7 }
  0x88   :  { %648 = vmatmul.mubr.msk.f32.vlgmr.msra.gmra.mrb[0].mxu0 %vm90_vm0, %v580_v23 }
  0x89   :  { %v56_v25 = vpop.permute.xlu0 %55  ;;  %650 = vmatprep.mubr.msk.f32.mxu0 %vm90_vm0, %v581_v22  ;;  %v59_v26 = vpop.permute.xlu1 %58  ;;  %676 = vmatpush3.bf16.msra.mxu0 %v835_v31 }
  0x8a   :  { %vm70_vm5 = vcmp.eq.s32.totalorder %v56_v25, %v41_v16  ;;  %vm71_vm6 = vcmp.eq.s32.totalorder %v59_v26, %v41_v16  ;;  %677 = vmatprep.subr.bf16.mxu0 %v751_v7 }
  0x8b   :  { %v583_v27 = vsel %vm70_vm5, 1.0, %v751_v7  ;;  %v584_v28 = vsel %vm71_vm6, 1.0, %v751_v7 }
  0x8c   :  { %651 = vmatmul.mubr.msk.f32.gmra.mrb[2].mxu0 %vm90_vm0, %v582_v24 }
  0x8d   :  { %653 = vmatprep.mubr.msk.f32.mxu0 %vm90_vm0, %v583_v27  ;;  %v62_v29 = vpop.permute.xlu0 %61  ;;  %678 = vmatpush3.bf16.msra.mxu0 %v844_v32  ;;  %v65_v38 = vpop.permute.xlu1 %64 }
  0x8e   :  { %vm72_vm7 = vcmp.eq.s32.totalorder %v62_v29, %v41_v16  ;;  %691 = vmatprep.subr.bf16.mxu0 %v751_v7  ;;  %vm73_vm9 = vcmp.eq.s32.totalorder %v65_v38, %v41_v16  ;;  %v604_v29 = vld [vmem:[%s907_s3] ss:$0 sm:$0xff] }
  0x8f   :  { %v585_v30 = vsel %vm72_vm7, 1.0, %v751_v7  ;;  %v586_v39 = vsel %vm73_vm9, 1.0, %v751_v7 }
  0x90   :  { %654 = vmatmul.mubr.msk.f32.gmra.mrb[4].mxu0 %vm90_vm0, %v584_v28 }
  0x91   :  { %656 = vmatprep.mubr.msk.f32.mxu0 %vm90_vm0, %v585_v30 }
  0x94   :  { %657 = vmatmul.mubr.msk.f32.gmra.mrb[6].mxu0 %vm90_vm0, %v586_v39 }
  0x95   :  { %679 = vmatprep.mubr.msk.bf16.mxu0 %vm752_vm8, %v751_v7 }
 0x15b   :  { %v649_v34 = vpop.f32.mrb[0].mxu0 }
 0x15c   :  { %v181_v35 = vpop.f32.mrb[1].mxu0 }
 0x15d   :  { %730 = vtanh.f32 %v181_v35 }
 0x15f   :  { %v652_v40 = vpop.f32.mrb[2].mxu0 }
 0x160   :  { %v191_v41 = vpop.f32.mrb[3].mxu0 }
 0x163   :  { %v655_v42 = vpop.f32.mrb[4].mxu0 }
 0x164   :  { %v201_v43 = vpop.f32.mrb[5].mxu0 }
 0x167   :  { %v731_v36 = vpop.eup %730  ;;  %v658_v51 = vpop.f32.mrb[6].mxu0 }
 0x168   :  { %v221_v37 = vpack.c.bf16 %v731_v36, %v731_v36  ;;  %v211_v52 = vpop.f32.mrb[7].mxu0 }
 0x16a   :  { %664 = vmatmul.mubr.msk.bf16.vlgmr.msra.gmra.mrb[0].mxu1 %vm90_vm0, %v221_v37 }
 0x16b   :  { %668 = vmatpush3.bf16.msra.mxu1 %v835_v31  ;;  %671 = vmatprep.mubr.msk.bf16.mxu1 %vm752_vm8, %v751_v7 }
 0x16c   :  { %669 = vmatprep.subr.bf16.mxu1 %v751_v7 }
 0x16f   :  { %670 = vmatpush3.bf16.msra.mxu1 %v844_v32 }
 0x170   :  { %683 = vmatprep.subr.bf16.mxu1 %v751_v7 }
 0x23d   :  { %v271_v44 = vpop.f32.mrb[0].mxu1 }
 0x23e   :  { %v277_v45 = vadd.f32 %v649_v34, %v271_v44  ;;  %v665_v46 = vpop.f32.mrb[1].mxu1 }
 0x23f   :  { %v274_v47 = vpop.f32.mrb[2].mxu1 }
 0x240   :  { %732 = vtanh.f32 %v277_v45  ;;  %v666_v48 = vpop.f32.mrb[3].mxu1 }
 0x24a   :  { %v733_v49 = vpop.eup %732 }
 0x24b   :  { %v279_v50 = vpack.c.bf16 %v733_v49, %v733_v49 }
 0x24d   :  { %672 = vmatmul.mubr.msk.bf16.vlgmr.msra.gmra.mrb[4].mxu1 %vm90_vm0, %v279_v50 }
 0x24e   :  { %684 = vmatpush3.bf16.msra.mxu1 %v835_v31  ;;  %687 = vmatprep.mubr.msk.bf16.mxu1 %vm752_vm8, %v751_v7 }
 0x24f   :  { %685 = vmatprep.subr.bf16.mxu1 %v751_v7 }
 0x252   :  { %686 = vmatpush3.bf16.msra.mxu1 %v844_v32 }
 0x253   :  { %699 = vmatprep.subr.bf16.mxu1 %v751_v7 }
 0x320   :  { %v317_v53 = vpop.f32.mrb[4].mxu1 }
 0x321   :  { %v323_v54 = vadd.f32 %v317_v53, %v191_v41  ;;  %v673_v55 = vpop.f32.mrb[5].mxu1 }
 0x322   :  { %v320_v56 = vpop.f32.mrb[6].mxu1 }
 0x323   :  { %734 = vtanh.f32 %v323_v54  ;;  %v674_v57 = vpop.f32.mrb[7].mxu1 }
 0x32d   :  { %v735_v58 = vpop.eup %734 }
 0x32e   :  { %v325_v59 = vpack.c.bf16 %v735_v58, %v735_v58 }
 0x330   :  { %680 = vmatmul.mubr.msk.bf16.vlgmr.msra.gmra.mrb[8].mxu0 %vm90_vm0, %v325_v59 }
 0x331   :  { %692 = vmatpush3.bf16.msra.mxu0 %v835_v31  ;;  %695 = vmatprep.mubr.msk.bf16.mxu0 %vm752_vm8, %v751_v7 }
 0x332   :  { %693 = vmatprep.subr.bf16.mxu0 %v751_v7 }
 0x335   :  { %694 = vmatpush3.bf16.msra.mxu0 %v844_v32 }
 0x336   :  { %707 = vmatprep.subr.bf16.mxu0 %v751_v7 }
 0x403   :  { %v363_v60 = vpop.f32.mrb[8].mxu0 }
 0x404   :  { %v369_v61 = vadd.f32 %v652_v40, %v363_v60  ;;  %v681_v62 = vpop.f32.mrb[9].mxu0 }
 0x405   :  { %v366_v63 = vpop.f32.mrb[10].mxu0 }
 0x406   :  { %736 = vtanh.f32 %v369_v61  ;;  %v682_v0 = vpop.f32.mrb[11].mxu0 }
 0x410   :  { %v737_v1 = vpop.eup %736 }
 0x411   :  { %v371_v2 = vpack.c.bf16 %v737_v1, %v737_v1 }
 0x413   :  { %688 = vmatmul.mubr.msk.bf16.vlgmr.msra.gmra.mrb[8].mxu1 %vm90_vm0, %v371_v2 }
 0x414   :  { %700 = vmatpush3.bf16.msra.mxu1 %v835_v31  ;;  %703 = vmatprep.mubr.msk.bf16.mxu1 %vm752_vm8, %v751_v7 }
 0x415   :  { %701 = vmatprep.subr.bf16.mxu1 %v751_v7 }
 0x418   :  { %702 = vmatpush3.bf16.msra.mxu1 %v844_v32 }
 0x4e6   :  { %v409_v3 = vpop.f32.mrb[8].mxu1 }
 0x4e7   :  { %v415_v4 = vadd.f32 %v409_v3, %v201_v43  ;;  %v689_v5 = vpop.f32.mrb[9].mxu1 }
 0x4e8   :  { %v412_v6 = vpop.f32.mrb[10].mxu1 }
 0x4e9   :  { %738 = vtanh.f32 %v415_v4  ;;  %v690_v8 = vpop.f32.mrb[11].mxu1 }
 0x4f3   :  { %v739_v9 = vpop.eup %738 }
 0x4f4   :  { %v417_v10 = vpack.c.bf16 %v739_v9, %v739_v9 }
 0x4f6   :  { %696 = vmatmul.mubr.msk.bf16.vlgmr.msra.gmra.mrb[12].mxu0 %vm90_vm0, %v417_v10 }
 0x4f7   :  { %708 = vmatpush3.bf16.msra.mxu0 %v835_v31  ;;  %711 = vmatprep.mubr.msk.bf16.mxu0 %vm752_vm8, %v751_v7 }
 0x4f8   :  { %709 = vmatprep.subr.bf16.mxu0 %v751_v7 }
 0x4fb   :  { %710 = vmatpush3.bf16.msra.mxu0 %v844_v32 }
 0x5c9   :  { %v455_v11 = vpop.f32.mrb[12].mxu0 }
 0x5ca   :  { %v461_v12 = vadd.f32 %v655_v42, %v455_v11  ;;  %v697_v13 = vpop.f32.mrb[13].mxu0 }
 0x5cb   :  { %v458_v14 = vpop.f32.mrb[14].mxu0 }
 0x5cc   :  { %740 = vtanh.f32 %v461_v12  ;;  %v698_v15 = vpop.f32.mrb[15].mxu0 }
 0x5d6   :  { %v741_v16 = vpop.eup %740 }
 0x5d7   :  { %v463_v17 = vpack.c.bf16 %v741_v16, %v741_v16 }
 0x5d9   :  { %704 = vmatmul.mubr.msk.bf16.vlgmr.msra.gmra.mrb[12].mxu1 %vm90_vm0, %v463_v17 }
 0x6ac   :  { %v501_v18 = vpop.f32.mrb[12].mxu1 }
 0x6ad   :  { %v507_v19 = vadd.f32 %v501_v18, %v211_v52  ;;  %v705_v20 = vpop.f32.mrb[13].mxu1 }
 0x6ae   :  { %v504_v21 = vpop.f32.mrb[14].mxu1 }
 0x6af   :  { %742 = vtanh.f32 %v507_v19  ;;  %v706_v22 = vpop.f32.mrb[15].mxu1 }
 0x6b9   :  { %v743_v23 = vpop.eup %742 }
 0x6ba   :  { %v509_v7 = vpack.c.bf16 %v743_v23, %v743_v23 }
 0x6bc   :  { %712 = vmatmul.mubr.msk.bf16.vlgmr.msra.gmra.mrb[16].mxu0 %vm90_vm0, %v509_v7 }
 0x78f   :  { %v547_v24 = vpop.f32.mrb[16].mxu0 }
 0x790   :  { %v553_v25 = vadd.f32 %v658_v51, %v547_v24  ;;  %v713_v26 = vpop.f32.mrb[17].mxu0 }
 0x791   :  { %v550_v27 = vpop.f32.mrb[18].mxu0 }
 0x792   :  { %744 = vtanh.f32 %v553_v25  ;;  %v714_v28 = vpop.f32.mrb[19].mxu0 }
 0x79c   :  { %v745_v30 = vpop.eup %744 }
 0x79d   :  { %v561_v31 = vmul.f32 %v745_v30, %v604_v29 }
 0x79f   :  { %v562_v32 = vsel %vm90_vm0, %v561_v31, 0.0 }
 0x7a0   :  { %563 = vadd.xlane.f32.xlu0 %v562_v32 }
 0x82d   :  { %v564_v34 = vpop.xlane.xlu0 %563 }
 0x82e   :  { %v566_v35 = vadd.f32 %v565_v33, %v564_v34 }
 0x830   :  { %v605_v36 = vmul.f32 -1.442695, %v566_v35 }
 0x832   :  { %746 = vpow2.f32 %v605_v36 }
 0x83c   :  { %v747_v37 = vpop.eup %746 }
 0x83d   :  { %v570_v38 = vadd.f32 1.0, %v747_v37 }
 0x83f   :  { %748 = vrcp.f32 %v570_v38 }
 0x849   :  { %v749_v39 = vpop.eup %748 }
 0x84a   :  { %574 = vst.msk [vmem:[%s909_s5] sm:$0xff] %vm573_vm10, %v749_v39 }

</bundles_post_ra>
